<compile_context>
chip_gen: v6e
topology: v6e:2x2x1
jax: 0.10.0
libtpu: 0.0.40
codegen_flags: <defaults>
</compile_context>

<pallas_src>
import functools
import math

import jax
import jax.numpy as jnp
from jax.experimental import pallas as pl
from jax.experimental.pallas import tpu as pltpu


def _round_up(x, m):
    return ((x + m - 1) // m) * m


def _cdiv(a, b):
    return (a + b - 1) // b


def _device_kind():
    try:
        return jax.devices()[0].device_kind.lower()
    except Exception:
        return ""


def _is_v7(kind):
    return ("v7" in kind) or ("tpu7" in kind)


def _label_smoothing_kernel(tgt_ref, x_ref, loss_ref, *rest, confidence, fill,
                            log_conf, log_fill, padding_val, n_rows, tile_n,
                            steps):
    if len(rest) == 2:
        dist_ref, acc_ref = rest
    else:
        dist_ref = None
        (acc_ref,) = rest

    p = pl.program_id(0)
    i = pl.program_id(1)

    @pl.when(i == 0)
    def _():
        acc_ref[...] = jnp.zeros_like(acc_ref)

    x = x_ref[...].astype(jnp.float32)   # (TN, V) log-probs (in-kernel upcast)
    tgt = tgt_ref[...]                   # (TN, 1) int32

    col = jax.lax.broadcasted_iota(jnp.int32, x.shape, 1)     # class index per column
    is_tgt = col == tgt                                       # scatter_(1, target, confidence)
    zero_mask = (col == padding_val) | (tgt == padding_val)   # pad column + pad rows

    if dist_ref is not None:
        # Smoothed target distribution (module stores this as self.true_dist).
        t = jnp.where(is_tgt, jnp.float32(confidence), jnp.float32(fill))
        t = jnp.where(zero_mask, jnp.float32(0.0), t)
        dist_ref[...] = t        # OOB rows of a partial block are dropped by Pallas

    # Rows past the true N (partial last block / clamped duplicated tail blocks)
    # must not contribute to the loss.  The global *unclamped* row index is
    # rebuilt from program ids; n_rows / tile_n / steps are compile-time constants.
    g = p * steps + i
    row = jax.lax.broadcasted_iota(jnp.int32, x.shape, 0) + g * tile_n
    keep = (row < n_rows) & jnp.logical_not(zero_mask)

    # KLDivLoss(reduction='sum'): t * (log t - x); t==0 contributes 0.
    # t only takes compile-time constants, so log t is constant-folded (no EUP log).
    contrib = jnp.where(
        keep,
        jnp.where(is_tgt,
                  jnp.float32(confidence) * (jnp.float32(log_conf) - x),
                  jnp.float32(fill) * (jnp.float32(log_fill) - x)),
        jnp.float32(0.0))

    # Fold rows into an (8, V) partial accumulator: pure VPU adds per step,
    # no per-step cross-lane reduction.
    tn, v = contrib.shape
    acc_ref[...] += jnp.sum(contrib.reshape(tn // 8, 8, v), axis=0)

    # Final cross-lane/sublane reduce + store exactly once per split.
    @pl.when(i == pl.num_programs(1) - 1)
    def _():
        loss_ref[...] = jnp.full(loss_ref.shape, jnp.sum(acc_ref[...]),
                                 jnp.float32)


def _choose_tile_n(n, v, itemsize, kind):
    # Memory-bound kernel: size tiles by bytes of x per tile (~4 MiB on v7x with
    # its 64-MiB VMEM, ~8 MiB on 128-MiB-VMEM chips).  Cap rows so the
    # lane-padded (tile_n, 1) target block stays small; never tile past N.
    budget = (4 << 20) if _is_v7(kind) else (8 << 20)
    rows = budget // max(1, v * itemsize)
    rows = max(8, min(4096, rows))
    mult = 8 if itemsize >= 4 else 16      # keep sub-32-bit inputs sublane aligned
    rows = min(rows, _round_up(n, mult))
    return _round_up(rows, mult)


def label_smoothing_loss(x, target, *, tgt_vocab_size, tgt_padding_val,
                         smoothing=0.0, tile_n=None, num_splits=None,
                         compute_true_dist=True):
    """Pallas forward of the PyTorch LabelSmoothing module.

    x: (N, V) float log-probs; target: (N,) int class indices.
    Returns (loss, true_dist) if compute_true_dist else loss.
    """
    N, V = x.shape
    assert V == tgt_vocab_size
    assert 0 <= tgt_padding_val < tgt_vocab_size, "padding index must be a valid class"

    confidence = 1.0 - smoothing
    fill = smoothing / (tgt_vocab_size - 2)
    # Guarded constant logs (0 * log 0 convention -> term is exactly 0 anyway).
    log_conf = math.log(confidence) if confidence > 0.0 else 0.0
    log_fill = math.log(fill) if fill > 0.0 else 0.0

    kind = _device_kind()
    itemsize = jnp.dtype(x.dtype).itemsize
    if tile_n is None:
        tile_n = _choose_tile_n(N, V, itemsize, kind)
    assert tile_n % 8 == 0

    nb = _cdiv(N, tile_n)                      # row blocks (last one may be partial)
    if num_splits is None:
        num_splits = 2 if _is_v7(kind) else 1  # one split per TensorCore
    num_splits = max(1, min(num_splits, nb))
    steps = _cdiv(nb, num_splits)

    # Only the tiny (N,) target is padded (to whole blocks); x / true_dist keep
    # their exact shapes.
    n_tgt = nb * tile_n
    tgt_p = target.astype(jnp.int32)
    if n_tgt != N:
        tgt_p = jnp.pad(tgt_p, (0, n_tgt - N), constant_values=tgt_padding_val)
    tgt2d = tgt_p.reshape(n_tgt, 1)

    last_block = nb - 1
    if num_splits * steps == nb:
        row_map = lambda p, i: (p * steps + i, 0)
    else:
        # Tail grid points past the last real block are clamped onto it; the
        # kernel masks their loss contribution (row >= N) and the identical
        # true_dist rewrite is harmless.
        row_map = lambda p, i: (jnp.minimum(p * steps + i, last_block), 0)

    kernel = functools.partial(
        _label_smoothing_kernel,
        confidence=confidence, fill=fill,
        log_conf=log_conf, log_fill=log_fill,
        padding_val=tgt_padding_val,
        n_rows=N, tile_n=tile_n, steps=steps)

    # Per-split partial loss as a lane-dense (1, 1, 128) block.
    out_shape = [jax.ShapeDtypeStruct((num_splits, 1, 128), jnp.float32)]
    out_specs = [pl.BlockSpec((1, 1, 128), lambda p, i: (p, 0, 0))]
    if compute_true_dist:
        out_shape.append(jax.ShapeDtypeStruct((N, V), jnp.float32))
        out_specs.append(pl.BlockSpec((tile_n, V), row_map))

    # VMEM: double-buffered x + dist tiles, lane-padded (tile_n, 1) target blocks
    # (~512 B/row/buffer), the (8, V) accumulator, plus slack for intermediates.
    tile_x = tile_n * V * itemsize
    tile_dist = tile_n * V * 4 if compute_true_dist else 0
    tile_tgt = tile_n * 128 * 4
    needed = 2 * (tile_x + tile_dist + tile_tgt) + 8 * V * 4 + (6 << 20)
    vmem_cap = (48 << 20) if _is_v7(kind) else (96 << 20)   # stay below physical VMEM
    vmem_limit = int(min(vmem_cap, max(32 << 20, needed)))

    bytes_accessed = (N * V * itemsize
                      + (N * V * 4 if compute_true_dist else 0)
                      + N * 4 + num_splits * 512)
    cost = pl.CostEstimate(flops=6 * N * V, transcendentals=0,
                           bytes_accessed=int(bytes_accessed))

    outs = pl.pallas_call(
        kernel,
        out_shape=tuple(out_shape),
        grid_spec=pltpu.PrefetchScalarGridSpec(
            num_scalar_prefetch=0,
            grid=(num_splits, steps),
            in_specs=[
                pl.BlockSpec((tile_n, 1), row_map),    # target
                pl.BlockSpec((tile_n, V), row_map),    # x (log-probs)
            ],
            out_specs=tuple(out_specs),
            scratch_shapes=[pltpu.VMEM((8, V), jnp.float32)],  # partial-sum accumulator
        ),
        compiler_params=pltpu.CompilerParams(
            dimension_semantics=("parallel", "arbitrary"),
            vmem_limit_bytes=vmem_limit),
        cost_estimate=cost,
    )(tgt2d, x)

    loss = jnp.sum(outs[0][:, 0, 0])
    if compute_true_dist:
        return loss, outs[1]
    return loss


def _reference(x, target, tgt_vocab_size, tgt_padding_val, smoothing):
    """Plain-JAX mirror of the PyTorch forward (for checking)."""
    x = x.astype(jnp.float32)
    N, V = x.shape
    fill = smoothing / (tgt_vocab_size - 2)
    dist = jnp.full((N, V), fill, jnp.float32)
    dist = dist.at[jnp.arange(N), target].set(1.0 - smoothing)
    dist = dist.at[:, tgt_padding_val].set(0.0)
    dist = jnp.where((target == tgt_padding_val)[:, None], 0.0, dist)
    loss = jnp.sum(jnp.where(dist > 0,
                             dist * (jnp.log(jnp.where(dist > 0, dist, 1.0)) - x),
                             0.0))
    return loss, dist


if __name__ == "__main__":
    tgt_vocab_size = 128
    tgt_padding_val = 0
    smoothing = 0.1

    key = jax.random.PRNGKey(0)
    k1, k2, k3, k4 = jax.random.split(key, 4)

    # --- Test 1: module-consistent small shapes (batch=2, seq=8 -> N=16 tokens). ---
    batch, seq = 2, 8
    N = batch * seq
    logits = jax.random.normal(k1, (N, tgt_vocab_size), dtype=jnp.float32)
    x = jax.nn.log_softmax(logits, axis=-1)                  # KLDivLoss expects log-probs
    target = jax.random.randint(k2, (N,), 0, tgt_vocab_size, dtype=jnp.int32)
    target = target.at[3].set(tgt_padding_val)               # exercise padding-row masking
    target = target.at[10].set(tgt_padding_val)

    loss, true_dist = label_smoothing_loss(
        x, target, tgt_vocab_size=tgt_vocab_size,
        tgt_padding_val=tgt_padding_val, smoothing=smoothing)
    jax.block_until_ready((loss, true_dist))

    ref_loss, ref_dist = _reference(x, target, tgt_vocab_size, tgt_padding_val, smoothing)
    assert true_dist.shape == (N, tgt_vocab_size)
    assert jnp.allclose(true_dist, ref_dist, atol=1e-6), "true_dist mismatch"
    assert jnp.allclose(loss, ref_loss, rtol=1e-5, atol=1e-5), "loss mismatch"

    # --- Test 2: partial blocks + 2-split grid + bf16 input (no x padding/slicing). ---
    N2 = 36
    logits2 = jax.random.normal(k3, (N2, tgt_vocab_size), dtype=jnp.float32)
    x2 = jax.nn.log_softmax(logits2, axis=-1).astype(jnp.bfloat16)
    target2 = jax.random.randint(k4, (N2,), 0, tgt_vocab_size, dtype=jnp.int32)
    target2 = target2.at[5].set(tgt_padding_val)

    loss2, dist2 = label_smoothing_loss(
        x2, target2, tgt_vocab_size=tgt_vocab_size,
        tgt_padding_val=tgt_padding_val, smoothing=smoothing,
        tile_n=16, num_splits=2)
    jax.block_until_ready((loss2, dist2))

    ref_loss2, ref_dist2 = _reference(x2, target2, tgt_vocab_size,
                                      tgt_padding_val, smoothing)
    assert dist2.shape == (N2, tgt_vocab_size)
    assert jnp.allclose(dist2, ref_dist2, atol=1e-6), "true_dist mismatch (partial blocks)"
    assert jnp.allclose(loss2, ref_loss2, rtol=1e-4, atol=1e-4), "loss mismatch (partial blocks)"

    # --- Test 3: loss-only mode (drops the N*V true_dist HBM write). ---
    loss3 = label_smoothing_loss(
        x, target, tgt_vocab_size=tgt_vocab_size,
        tgt_padding_val=tgt_padding_val, smoothing=smoothing,
        compute_true_dist=False)
    jax.block_until_ready(loss3)
    assert jnp.allclose(loss3, ref_loss, rtol=1e-5, atol=1e-5), "loss-only mismatch"

    print("KERNEL_OK")
</pallas_src>

<mosaic_0001>
module attributes {stable_mosaic.version = 11 : i64} {
  func.func @_label_smoothing_kernel(%arg0: i32, %arg1: i32, %arg2: memref<16x1xi32, #tpu.memory_space<vmem>>, %arg3: memref<16x128xf32, #tpu.memory_space<vmem>>, %arg4: memref<1x1x128xf32, #tpu.memory_space<vmem>>, %arg5: memref<16x128xf32, #tpu.memory_space<vmem>>, %arg6: memref<8x128xf32, #tpu.memory_space<vmem>>) attributes {dimension_semantics = [#tpu.dimension_semantics<parallel>, #tpu.dimension_semantics<arbitrary>], iteration_bounds = array<i64: 1, 1>, scalar_prefetch = 0 : i64, scratch_operands = 1 : i64, tpu.core_type = #tpu.core_type<tc>, window_params = [{transform_indices = @transform_0, window_bounds = array<i64: 16, 1>}, {transform_indices = @transform_1, window_bounds = array<i64: 16, 128>}, {transform_indices = @transform_2, window_bounds = array<i64: 1, 1, 128>}, {transform_indices = @transform_3, window_bounds = array<i64: 16, 128>}]} {
    %c0_i32 = arith.constant 0 : i32
    %0 = arith.cmpi eq, %arg1, %c0_i32 : i32
    %1 = arith.extui %0 : i1 to i32
    %c0_i32_0 = arith.constant 0 : i32
    %2 = arith.cmpi ne, %1, %c0_i32_0 : i32
    scf.if %2 {
      %cst_24 = arith.constant 0.000000e+00 : f32
      %49 = vector.broadcast %cst_24 : f32 to vector<8x128xf32>
      %c0_25 = arith.constant 0 : index
      %c0_26 = arith.constant 0 : index
      %50 = vector.load %arg6[%c0_25, %c0_26] : memref<8x128xf32, #tpu.memory_space<vmem>>, vector<8x128xf32>
      tpu.vector_store %arg6[%c0_25, %c0_26], %49 {strides = array<i32>} : memref<8x128xf32, #tpu.memory_space<vmem>>, vector<8x128xf32>,
    } else {
    }
    %c0 = arith.constant 0 : index
    %c0_1 = arith.constant 0 : index
    %3 = vector.load %arg3[%c0, %c0_1] : memref<16x128xf32, #tpu.memory_space<vmem>>, vector<16x128xf32>
    %c0_2 = arith.constant 0 : index
    %c0_3 = arith.constant 0 : index
    %4 = vector.load %arg2[%c0_2, %c0_3] : memref<16x1xi32, #tpu.memory_space<vmem>>, vector<16x1xi32>
    %5 = tpu.iota {dimensions = array<i32: 1>} : vector<16x128xi32>
    %6 = vector.broadcast %4 : vector<16x1xi32> to vector<16x128xi32>
    %7 = arith.cmpi eq, %5, %6 : vector<16x128xi32>
    %c0_i32_4 = arith.constant 0 : i32
    %8 = vector.broadcast %c0_i32_4 : i32 to vector<16x128xi32>
    %9 = arith.cmpi eq, %5, %8 : vector<16x128xi32>
    %c0_i32_5 = arith.constant 0 : i32
    %10 = vector.broadcast %c0_i32_5 : i32 to vector<16x1xi32>
    %11 = arith.cmpi eq, %4, %10 : vector<16x1xi32>
    %12 = vector.broadcast %11 : vector<16x1xi1> to vector<16x128xi1>
    %13 = arith.ori %9, %12 : vector<16x128xi1>
    %cst = arith.constant 0.899999976 : f32
    %cst_6 = arith.constant 7.93650805E-4 : f32
    %14 = vector.broadcast %cst : f32 to vector<16x128xf32>
    %15 = vector.broadcast %cst_6 : f32 to vector<16x128xf32>
    %16 = arith.select %7, %14, %15 : vector<16x128xi1>, vector<16x128xf32>
    %cst_7 = arith.constant 0.000000e+00 : f32
    %17 = vector.broadcast %cst_7 : f32 to vector<16x128xf32>
    %18 = arith.select %13, %17, %16 : vector<16x128xi1>, vector<16x128xf32>
    %c0_8 = arith.constant 0 : index
    %c0_9 = arith.constant 0 : index
    %19 = vector.load %arg5[%c0_8, %c0_9] : memref<16x128xf32, #tpu.memory_space<vmem>>, vector<16x128xf32>
    tpu.vector_store %arg5[%c0_8, %c0_9], %18 {strides = array<i32>} : memref<16x128xf32, #tpu.memory_space<vmem>>, vector<16x128xf32>,
    %c1_i32 = arith.constant 1 : i32
    %20 = arith.muli %arg0, %c1_i32 : i32
    %21 = arith.addi %20, %arg1 : i32
    %22 = tpu.iota {dimensions = array<i32: 0>} : vector<16x128xi32>
    %c16_i32 = arith.constant 16 : i32
    %23 = arith.muli %21, %c16_i32 : i32
    %24 = vector.broadcast %23 : i32 to vector<16x128xi32>
    %25 = arith.addi %22, %24 : vector<16x128xi32>
    %c16_i32_10 = arith.constant 16 : i32
    %26 = vector.broadcast %c16_i32_10 : i32 to vector<16x128xi32>
    %27 = arith.cmpi slt, %25, %26 : vector<16x128xi32>
    %cst_11 = arith.constant dense<true> : vector<16x128xi1>
    %28 = arith.xori %13, %cst_11 : vector<16x128xi1>
    %29 = arith.andi %27, %28 : vector<16x128xi1>
    %cst_12 = arith.constant -0.105360515 : f32
    %30 = vector.broadcast %cst_12 : f32 to vector<16x128xf32>
    %31 = arith.subf %30, %3 : vector<16x128xf32>
    %cst_13 = arith.constant 0.899999976 : f32
    %32 = vector.broadcast %cst_13 : f32 to vector<16x128xf32>
    %33 = arith.mulf %32, %31 : vector<16x128xf32>
    %cst_14 = arith.constant -7.1388669 : f32
    %34 = vector.broadcast %cst_14 : f32 to vector<16x128xf32>
    %35 = arith.subf %34, %3 : vector<16x128xf32>
    %cst_15 = arith.constant 7.93650805E-4 : f32
    %36 = vector.broadcast %cst_15 : f32 to vector<16x128xf32>
    %37 = arith.mulf %36, %35 : vector<16x128xf32>
    %38 = arith.select %7, %33, %37 : vector<16x128xi1>, vector<16x128xf32>
    %cst_16 = arith.constant 0.000000e+00 : f32
    %39 = vector.broadcast %cst_16 : f32 to vector<16x128xf32>
    %40 = arith.select %29, %38, %39 : vector<16x128xi1>, vector<16x128xf32>
    %c0_17 = arith.constant 0 : index
    %c0_18 = arith.constant 0 : index
    %41 = vector.load %arg6[%c0_17, %c0_18] : memref<8x128xf32, #tpu.memory_space<vmem>>, vector<8x128xf32>
    %42 = vector.shape_cast %40 : vector<16x128xf32> to vector<2x8x128xf32>
    %cst_19 = arith.constant dense<0.000000e+00> : vector<8x128xf32>
    %43 = vector.multi_reduction <add>, %42, %cst_19 [0] : vector<2x8x128xf32> to vector<8x128xf32>
    %44 = arith.addf %41, %43 : vector<8x128xf32>
    %c0_20 = arith.constant 0 : index
    %c0_21 = arith.constant 0 : index
    %45 = vector.load %arg6[%c0_20, %c0_21] : memref<8x128xf32, #tpu.memory_space<vmem>>, vector<8x128xf32>
    tpu.vector_store %arg6[%c0_20, %c0_21], %44 {strides = array<i32>} : memref<8x128xf32, #tpu.memory_space<vmem>>, vector<8x128xf32>,
    %c0_i32_22 = arith.constant 0 : i32
    %46 = arith.cmpi eq, %arg1, %c0_i32_22 : i32
    %47 = arith.extui %46 : i1 to i32
    %c0_i32_23 = arith.constant 0 : i32
    %48 = arith.cmpi ne, %47, %c0_i32_23 : i32
    scf.if %48 {
      %c0_24 = arith.constant 0 : index
      %c0_25 = arith.constant 0 : index
      %49 = vector.load %arg6[%c0_24, %c0_25] : memref<8x128xf32, #tpu.memory_space<vmem>>, vector<8x128xf32>
      %50 = vector.shape_cast %49 : vector<8x128xf32> to vector<1x8x128xf32>
      %cst_26 = arith.constant dense<0.000000e+00> : vector<1xf32>
      %51 = vector.multi_reduction <add>, %50, %cst_26 [1, 2] : vector<1x8x128xf32> to vector<1xf32>
      %52 = vector.shape_cast %51 : vector<1xf32> to vector<1x1x1xf32>
      %53 = vector.extract %52[0, 0, 0] : f32 from vector<1x1x1xf32>
      %54 = vector.broadcast %53 : f32 to vector<1x1x128xf32>
      %c0_27 = arith.constant 0 : index
      %c0_28 = arith.constant 0 : index
      %c0_29 = arith.constant 0 : index
      %55 = vector.load %arg4[%c0_27, %c0_28, %c0_29] : memref<1x1x128xf32, #tpu.memory_space<vmem>>, vector<1x1x128xf32>
      tpu.vector_store %arg4[%c0_27, %c0_28, %c0_29], %54 {strides = array<i32>} : memref<1x1x128xf32, #tpu.memory_space<vmem>>, vector<1x1x128xf32>,
    } else {
    }
    return
  }
  func.func @transform_0(%arg0: i32, %arg1: i32) -> (i32, i32) {
    %c1_i32 = arith.constant 1 : i32
    %0 = arith.muli %arg0, %c1_i32 : i32
    %1 = arith.addi %0, %arg1 : i32
    %c0_i32 = arith.constant 0 : i32
    %c0_i32_0 = arith.constant 0 : i32
    return %1, %c0_i32 : i32, i32
  }
  func.func @transform_1(%arg0: i32, %arg1: i32) -> (i32, i32) {
    %c1_i32 = arith.constant 1 : i32
    %0 = arith.muli %arg0, %c1_i32 : i32
    %1 = arith.addi %0, %arg1 : i32
    %c0_i32 = arith.constant 0 : i32
    %c0_i32_0 = arith.constant 0 : i32
    return %1, %c0_i32 : i32, i32
  }
  func.func @transform_2(%arg0: i32, %arg1: i32) -> (i32, i32, i32) {
    %c0_i32 = arith.constant 0 : i32
    %c0_i32_0 = arith.constant 0 : i32
    %c0_i32_1 = arith.constant 0 : i32
    return %arg0, %c0_i32, %c0_i32_0 : i32, i32, i32
  }
  func.func @transform_3(%arg0: i32, %arg1: i32) -> (i32, i32) {
    %c1_i32 = arith.constant 1 : i32
    %0 = arith.muli %arg0, %c1_i32 : i32
    %1 = arith.addi %0, %arg1 : i32
    %c0_i32 = arith.constant 0 : i32
    %c0_i32_0 = arith.constant 0 : i32
    return %1, %c0_i32 : i32, i32
  }
}

</mosaic_0001>

<bundles_post_ra>
// kernel: tpu_custom_call.1
= control target key start
LH: loop header
LB: loop body
LE: loop exit
PB: predicated region body
PF: predicated region fallthrough
CT: control target
= control target key end

     0   :  { %9 = vsyncpa [#allocation4], 0  ;;  %v247_v2 = vmov 0   ;;  %s294_s0 = inlined_call_operand.vmem [shape: s32[16,1], index: 0, kind: input, shape index: {}]   ;;  %s295_s1 = inlined_call_operand.vmem [shape: f32[16,128], index: 1, kind: input, shape index: {}]   ;;  %s296_s2 = inlined_call_operand.hbm [shape: f32[1,1,128], index: 2, kind: output, shape index: {0}]   ;;  %s297_s3 = inlined_call_operand.hbm [shape: f32[16,128], index: 3, kind: output, shape index: {1}]  }
   0x1   :  { %v68_v0 = vld [vmem:[%s294_s0] sm:$0xff]  ;;  %v69_v1 = vld [vmem:[%s294_s0 + $0x8] sm:$0xff]  ;;  %202 = vset.pattern.permute.xlu1 %v247_v2  ;;  %201 = vset.pattern.permute.xlu0 %v247_v2 }
   0x2   :  { %vm81_vm0 = vcmp.eq.s32.totalorder %v68_v0, 0  ;;  %vm82_vm1 = vcmp.eq.s32.totalorder %v69_v1, 0  ;;  %73 = vperm.xlu1 %202, %v68_v0  }
   0x3   :  { %v83_v3 = vsel %vm81_vm0, 1, %v247_v2  ;;  %v84_v4 = vsel %vm82_vm1, 1, %v247_v2 }
   0x4   :  { %86 = vperm.xlu0 %201, %v83_v3  }
   0x5   :  { %10 = vsyncpa [#allocation6], 0  ;;  %v70_v5 = vlaneseq  ;;  %v66_v6 = vld [vmem:[%s295_s1] sm:$0xff]  ;;  %v67_v9 = vld [vmem:[%s295_s1 + $0x8] sm:$0xff]  ;;  %v248_v16 = vmov 0.0007936508  }
   0x6   :  { %76 = vperm.xlu1 %202, %v69_v1   ;;  %v115_v8 = vsub.f32 -0.105360515, %v66_v6  ;;  %v119_v10 = vsub.f32 -7.138867, %v66_v6  ;;  %v116_v12 = vsub.f32 -0.105360515, %v67_v9 }
   0x7   :  { %v71_v7 = vand.u32 127, %v70_v5  ;;  %v120_v13 = vsub.f32 -7.138867, %v67_v9  ;;  %vm249_vm7 = vmmov 1   ;;  %s250_s1 = smov [#allocation5]  }
   0x8   :  { %89 = vperm.xlu0 %201, %v84_v4   ;;  %v117_v14 = vmul.f32 0.9, %v115_v8  ;;  %v121_v18 = vmul.f32 0.0007936508, %v119_v10  ;;  %v118_v21 = vmul.f32 0.9, %v116_v12 }
   0x9   :  { %vm80_vm2 = vcmp.eq.s32.totalorder %v71_v7, 0  ;;  %v122_v22 = vmul.f32 0.0007936508, %v120_v13  ;;  %s165_s19 = sshll.u32 %s250_s1, 4  ;;  %s166_s19 = int_to_ptr.vmem [resolvable:$true] %s165_s19 }
   0xa   :  { %s203_s20 = scalar_lea.vmem %s166_s19, 256  ;;  %p208_p1 = scmp.lt.s32.totalorder %s166_s19, %s166_s19 }
   0xb   :  { %p204_p0 = scmp.ne.s32.totalorder %s166_s19, %s203_s20  ;;  %p209_p2 = scmp.lt.s32.totalorder %s203_s20, %s203_s20 }
   0xd   :  { %p210_p3 = por %p209_p2, %p208_p1 }
   0xf   :  { %p211_p4 = pnand %p210_p3, %p204_p0 }
  0x7d   :  { %v74_v11 = vpop.permute.xlu1 %73 }
  0x7e   :  { %vm78_vm3 = vcmp.eq.s32.totalorder %v71_v7, %v74_v11 }
  0x7f   :  { %v87_v15 = vpop.permute.xlu0 %86  ;;  %v95_v17 = vsel %vm78_vm3, 0.9, %v248_v16  ;;  %v123_v24 = vsel %vm78_vm3, %v117_v14, %v121_v18 }
  0x80   :  { %vm91_vm4 = vcmp.eq.s32.totalorder %v87_v15, 1 }
  0x81   :  { %vm93_vm5 = vmor %vm80_vm2, %vm91_vm4  ;;  %v77_v20 = vpop.permute.xlu1 %76 }
  0x82   :  { %v97_v19 = vsel %vm93_vm5, 0.0, %v95_v17  ;;  %vm79_vm6 = vcmp.eq.s32.totalorder %v71_v7, %v77_v20  ;;  %vm111_vm8 = vmxor %vm93_vm5, %vm249_vm7 }
  0x83   :  { %99 = vst [vmem:[#allocation5] sm:$0xff] %v97_v19  ;;  %v90_v23 = vpop.permute.xlu0 %89  ;;  %v96_v25 = vsel %vm79_vm6, 0.9, %v248_v16  ;;  %v124_v26 = vsel %vm79_vm6, %v118_v21, %v122_v22  ;;  %v125_v28 = vsel %vm111_vm8, %v123_v24, 0.0 }
  0x84   :  { %vm92_vm9 = vcmp.eq.s32.totalorder %v90_v23, 1 }
  0x85   :  { %vm94_vm10 = vmor %vm80_vm2, %vm92_vm9 }
  0x86   :  { %v98_v27 = vsel %vm94_vm10, 0.0, %v96_v25  ;;  %vm112_vm11 = vmxor %vm94_vm10, %vm249_vm7 }
  0x87   :  { %100 = vst [vmem:[#allocation5 + $0x8] sm:$0xff] %v98_v27  ;;  %v126_v29 = vsel %vm112_vm11, %v124_v26, 0.0 }
  0x88   :  { %v128_v30 = vadd.f32 %v126_v29, %v125_v28 }
  0x8a   :  { %135 = vadd.xlane.f32.xlu0 %v128_v30 }
  0x8b   :  { %214 = shalt.err (!%p211_p4)
}
  0x8c   :  { %s251_s21 = smov 128   ;;  %s252_s22 = smov 8  }
  0x8d   :  { %171 = dma.vmem_to_hbm [thread:$0]  %s166_s19, 256, %s297_s3, [#allocation6], %s251_s21, %s251_s21, %s252_s22  }
  0x8e   :  { %s253_s25 = smov [#allocation3]  }
  0x8f   :  { %s152_s26 = sshll.u32 %s253_s25, 4  ;;  %s153_s26 = int_to_ptr.vmem [resolvable:$true] %s152_s26 }
  0x90   :  { %s223_s28 = scalar_lea.vmem %s153_s26, 16  ;;  %s227_s29 = scalar_lea.vmem %s153_s26, 32 }
  0x91   :  { %p224_p5 = scmp.ne.s32.totalorder %s153_s26, %s223_s28  ;;  %p228_p6 = scmp.lt.s32.totalorder %s153_s26, %s153_s26 }
  0x92   :  { %p229_p7 = scmp.lt.s32.totalorder %s227_s29, %s223_s28 }
  0x94   :  { %p230_p8 = por %p229_p7, %p228_p6 }
  0x96   :  { %p231_p9 = pnand %p230_p8, %p224_p5 }
 0x113   :  { %v136_v31 = vpop.xlane.xlu0 %135 }
 0x114   :  { %v137_v32 = vrot.slane %v136_v31, 4 }
 0x116   :  { %v138_v33 = vadd.f32 %v137_v32, %v136_v31 }
 0x118   :  { %v139_v34 = vrot.slane %v138_v33, 2 }
 0x11a   :  { %v140_v35 = vadd.f32 %v139_v34, %v138_v33 }
 0x11c   :  { %v141_v36 = vrot.slane %v140_v35, 1 }
 0x11e   :  { %v142_v37 = vadd.f32 %v141_v36, %v140_v35 }
 0x120   :  { %192 = vpush %v142_v37 }
 0x151   :  { %s193_s27 = spop %192 }
 0x152   :  { %v144_v38 = vstv %s193_s27 }
 0x153   :  { %145 = vst [vmem:[#allocation3] sm:$0x1] %v144_v38 }
 0x154   :  { %234 = shalt.err (!%p231_p9)
}
 0x155   :  { %155 = dma.vmem_to_hbm [thread:$0]  %s153_s26, 16, %s296_s2, [#allocation4]  }
 0x156   :  { %243 = dma.done.wait [#allocation4], 16  }
 0x157   :  { %244 = vsyncadd [#allocation4], 4294967280 }
 0x158   :  { %245 = dma.done.wait [#allocation6], 256  }
 0x159   :  { %246 = vsyncadd [#allocation6], 4294967040 }
 0x15a   :  { %178 = vsyncpa [#allocation4], 1 }
 0x15b   :  { %179 = vsyncpa [#allocation6], 1 }

</bundles_post_ra>
